<compile_context>
chip_gen: v7x
topology: tpu7x:2x2x1
jax: 0.10.0
libtpu: 0.0.40
codegen_flags: <defaults>
</compile_context>

<pallas_src>
import jax
import jax.numpy as jnp
from jax import lax
from jax.experimental import pallas as pl
from jax.experimental.pallas import tpu as pltpu


# ----------------------------------------------------------------------------
# Fused Pallas kernel: conv1 -> conv2 -> conv3 -> linear -> sigmoid
# ----------------------------------------------------------------------------
def _fused_cheb_kernel(L_ref, X_ref,
                       Wc1_ref, b1_ref,
                       Wc2_ref, b2_ref,
                       Wc3_ref, b3_ref,
                       Wlt_ref, bl_ref,
                       out_ref):
    # L_hat is read once (bf16) and reused by all three layers.
    L = L_ref[...]                                   # (N, N) bf16

    def cheb_layer(h_f32, Wc_bf16, b_f32):
        """out = [T0 | T1 | L@T1] @ Wcat + b, then LeakyReLU(0.01).

        Wcat = concat([W0 - W2, W1, 2*W2], axis=0) is prepared host-side, so
        T2 = 2*L@T1 - T0 never needs to be materialized.
        """
        h = h_f32.astype(jnp.bfloat16)                          # T0
        t1 = jnp.dot(L, h, preferred_element_type=jnp.float32)  # T1 = L @ T0
        t1_bf = t1.astype(jnp.bfloat16)
        lt1 = jnp.dot(L, t1_bf, preferred_element_type=jnp.float32)  # L @ T1
        xcat = jnp.concatenate([h, t1_bf, lt1.astype(jnp.bfloat16)], axis=-1)
        y = jnp.dot(xcat, Wc_bf16, preferred_element_type=jnp.float32) + b_f32
        # LeakyReLU, PyTorch default negative_slope = 0.01 (f32 elementwise).
        return jnp.where(y >= 0.0, y, 0.01 * y)

    h = cheb_layer(X_ref[...].astype(jnp.float32), Wc1_ref[...], b1_ref[...])
    h = cheb_layer(h, Wc2_ref[...], b2_ref[...])
    h = cheb_layer(h, Wc3_ref[...], b3_ref[...])

    # Linear(hidden3 -> 1) + Sigmoid, emitted as a lane-dense (1, N) row:
    #   y[0, n] = sum_f Wl[f, 0] * h[n, f] + bl
    y = lax.dot_general(Wlt_ref[...], h.astype(jnp.bfloat16),
                        dimension_numbers=(((1,), (1,)), ((), ())),
                        preferred_element_type=jnp.float32) + bl_ref[...]
    sig = pl.reciprocal(1.0 + jnp.exp(-y), approx=True)   # exp/recip on the EUP
    out_ref[...] = sig.astype(out_ref.dtype)


# ----------------------------------------------------------------------------
# Wrapper: host-side weight folding + single pallas_call (whole-array VMEM)
# ----------------------------------------------------------------------------
def _fold_cheb_weights(W):
    """(3, F_in, F_out) -> (3*F_in, F_out) with the recurrence folded in."""
    Wcat = jnp.concatenate([W[0] - W[2], W[1], 2.0 * W[2]], axis=0)
    return Wcat.astype(jnp.bfloat16)


def cheb_conv_forward(X, L_hat, params):
    """Full Cheb_Conv forward pass (eval mode). Returns shape (N,)."""
    N = X.shape[0]

    Wc1 = _fold_cheb_weights(params["W1"])
    Wc2 = _fold_cheb_weights(params["W2"])
    Wc3 = _fold_cheb_weights(params["W3"])
    Wl_t = params["Wl"].T.astype(jnp.bfloat16)        # (1, hidden3)
    L_bf = L_hat.astype(jnp.bfloat16)                 # halve HBM traffic for NxN

    vmem = pl.BlockSpec(memory_space=pltpu.MemorySpace.VMEM)
    out_row = pl.pallas_call(
        _fused_cheb_kernel,
        out_shape=jax.ShapeDtypeStruct((1, N), jnp.float32),
        in_specs=[vmem] * 10,
        out_specs=vmem,
    )(L_bf, X,
      Wc1, params["b1"],
      Wc2, params["b2"],
      Wc3, params["b3"],
      Wl_t, params["bl"])

    return out_row[0]                                  # (N,)  == .squeeze(1)


# ----------------------------------------------------------------------------
# Graph preprocessing (glue, plain JAX): build dense scaled Laplacian
#   L_hat = (2/lambda_max) * (I - D^{-1/2} A D^{-1/2}) - I
#         = -D^{-1/2} A D^{-1/2}          (lambda_max = 2.0, PyG default)
# ----------------------------------------------------------------------------
def build_scaled_laplacian(edge_index, edge_weight, num_nodes):
    row, col = edge_index[0], edge_index[1]
    A = jnp.zeros((num_nodes, num_nodes), jnp.float32).at[row, col].add(edge_weight)
    deg = jnp.sum(A, axis=1)
    d_inv_sqrt = jnp.where(deg > 0, 1.0 / jnp.sqrt(jnp.maximum(deg, 1e-12)), 0.0)
    L_hat = -(d_inv_sqrt[:, None] * A * d_inv_sqrt[None, :])
    return L_hat


# ----------------------------------------------------------------------------
# Pure-JAX f32 reference (for tolerance check only)
# ----------------------------------------------------------------------------
def reference_forward(X, L_hat, params):
    def cheb(h, W, b):
        t0 = h
        t1 = L_hat @ t0
        t2 = 2.0 * (L_hat @ t1) - t0
        y = t0 @ W[0] + t1 @ W[1] + t2 @ W[2] + b
        return jnp.where(y >= 0.0, y, 0.01 * y)

    h = cheb(X, params["W1"], params["b1"])
    h = cheb(h, params["W2"], params["b2"])
    h = cheb(h, params["W3"], params["b3"])
    y = h @ params["Wl"] + params["bl"]
    return jax.nn.sigmoid(y)[:, 0]


# ----------------------------------------------------------------------------
# Main
# ----------------------------------------------------------------------------
if __name__ == "__main__":
    key = jax.random.PRNGKey(0)

    # Small shapes consistent with the module
    N = 16          # number of graph nodes
    input_dim = 8
    hidden1, hidden2, hidden3 = 32, 16, 8

    # Node features
    key, k = jax.random.split(key)
    X = jax.random.normal(k, (N, input_dim), jnp.float32)

    # Simple symmetric ring graph with positive weights
    src = jnp.arange(N, dtype=jnp.int32)
    dst = (src + 1) % N
    edge_index = jnp.stack([jnp.concatenate([src, dst]),
                            jnp.concatenate([dst, src])], axis=0)
    key, k = jax.random.split(key)
    w_half = jax.random.uniform(k, (N,), jnp.float32, 0.5, 1.5)
    edge_weight = jnp.concatenate([w_half, w_half])

    L_hat = build_scaled_laplacian(edge_index, edge_weight, N)

    # Deterministic parameter init (synthetic; not a checkpoint load)
    def init_w(key, shape, scale=0.1):
        return scale * jax.random.normal(key, shape, jnp.float32)

    keys = jax.random.split(key, 8)
    params = {
        "W1": init_w(keys[0], (3, input_dim, hidden1)),
        "b1": init_w(keys[1], (1, hidden1)),
        "W2": init_w(keys[2], (3, hidden1, hidden2)),
        "b2": init_w(keys[3], (1, hidden2)),
        "W3": init_w(keys[4], (3, hidden2, hidden3)),
        "b3": init_w(keys[5], (1, hidden3)),
        "Wl": init_w(keys[6], (hidden3, 1)),
        "bl": init_w(keys[7], (1, 1)),
    }

    out = cheb_conv_forward(X, L_hat, params)
    jax.block_until_ready(out)

    assert out.shape == (N,), out.shape
    assert bool(jnp.all((out >= 0.0) & (out <= 1.0)))

    # Tolerance check vs. f32 reference (kernel uses bf16 matmuls + approx recip)
    ref = reference_forward(X, L_hat, params)
    max_err = float(jnp.max(jnp.abs(out - ref)))
    assert max_err < 3e-2, f"max abs err vs reference = {max_err}"

    print("KERNEL_OK")
</pallas_src>

<mosaic_0001>
module attributes {stable_mosaic.version = 11 : i64} {
  func.func @_fused_cheb_kernel(%arg0: memref<16x16xbf16, #tpu.memory_space<vmem>>, %arg1: memref<16x8xf32, #tpu.memory_space<vmem>>, %arg2: memref<24x32xbf16, #tpu.memory_space<vmem>>, %arg3: memref<1x32xf32, #tpu.memory_space<vmem>>, %arg4: memref<96x16xbf16, #tpu.memory_space<vmem>>, %arg5: memref<1x16xf32, #tpu.memory_space<vmem>>, %arg6: memref<48x8xbf16, #tpu.memory_space<vmem>>, %arg7: memref<1x8xf32, #tpu.memory_space<vmem>>, %arg8: memref<1x8xbf16, #tpu.memory_space<vmem>>, %arg9: memref<1x1xf32, #tpu.memory_space<vmem>>, %arg10: memref<1x16xf32, #tpu.memory_space<vmem>>) attributes {dimension_semantics = [], scalar_prefetch = 0 : i64, scratch_operands = 0 : i64, tpu.core_type = #tpu.core_type<tc>} {
    %c0 = arith.constant 0 : index
    %c0_0 = arith.constant 0 : index
    %0 = vector.load %arg0[%c0, %c0_0] : memref<16x16xbf16, #tpu.memory_space<vmem>>, vector<16x16xbf16>
    %c0_1 = arith.constant 0 : index
    %c0_2 = arith.constant 0 : index
    %1 = vector.load %arg1[%c0_1, %c0_2] : memref<16x8xf32, #tpu.memory_space<vmem>>, vector<16x8xf32>
    %c0_3 = arith.constant 0 : index
    %c0_4 = arith.constant 0 : index
    %2 = vector.load %arg2[%c0_3, %c0_4] : memref<24x32xbf16, #tpu.memory_space<vmem>>, vector<24x32xbf16>
    %c0_5 = arith.constant 0 : index
    %c0_6 = arith.constant 0 : index
    %3 = vector.load %arg3[%c0_5, %c0_6] : memref<1x32xf32, #tpu.memory_space<vmem>>, vector<1x32xf32>
    %4 = arith.truncf %1 : vector<16x8xf32> to vector<16x8xbf16>
    %cst = arith.constant dense<0.000000e+00> : vector<16x8xf32>
    %5 = tpu.matmul %0, %4, %cst {dimension_numbers = #tpu.dot_dimension_numbers<[1], [0], [0], [1], [0, 0, 1, 1], [], []>} : vector<16x16xbf16>, vector<16x8xbf16>, vector<16x8xf32> -> vector<16x8xf32>
    %6 = arith.truncf %5 : vector<16x8xf32> to vector<16x8xbf16>
    %cst_7 = arith.constant dense<0.000000e+00> : vector<16x8xf32>
    %7 = tpu.matmul %0, %6, %cst_7 {dimension_numbers = #tpu.dot_dimension_numbers<[1], [0], [0], [1], [0, 0, 1, 1], [], []>} : vector<16x16xbf16>, vector<16x8xbf16>, vector<16x8xf32> -> vector<16x8xf32>
    %8 = arith.truncf %7 : vector<16x8xf32> to vector<16x8xbf16>
    %9 = tpu.concatenate %4, %6, %8 in 1 : vector<16x8xbf16>, vector<16x8xbf16>, vector<16x8xbf16> -> vector<16x24xbf16>
    %cst_8 = arith.constant dense<0.000000e+00> : vector<16x32xf32>
    %10 = tpu.matmul %9, %2, %cst_8 {dimension_numbers = #tpu.dot_dimension_numbers<[1], [0], [0], [1], [0, 0, 1, 1], [], []>} : vector<16x24xbf16>, vector<24x32xbf16>, vector<16x32xf32> -> vector<16x32xf32>
    %11 = vector.broadcast %3 : vector<1x32xf32> to vector<16x32xf32>
    %12 = arith.addf %10, %11 : vector<16x32xf32>
    %cst_9 = arith.constant 0.000000e+00 : f32
    %13 = vector.broadcast %cst_9 : f32 to vector<16x32xf32>
    %14 = arith.cmpf oge, %12, %13 : vector<16x32xf32>
    %cst_10 = arith.constant 0.00999999977 : f32
    %15 = vector.broadcast %cst_10 : f32 to vector<16x32xf32>
    %16 = arith.mulf %15, %12 : vector<16x32xf32>
    %17 = arith.select %14, %12, %16 : vector<16x32xi1>, vector<16x32xf32>
    %c0_11 = arith.constant 0 : index
    %c0_12 = arith.constant 0 : index
    %18 = vector.load %arg4[%c0_11, %c0_12] : memref<96x16xbf16, #tpu.memory_space<vmem>>, vector<96x16xbf16>
    %c0_13 = arith.constant 0 : index
    %c0_14 = arith.constant 0 : index
    %19 = vector.load %arg5[%c0_13, %c0_14] : memref<1x16xf32, #tpu.memory_space<vmem>>, vector<1x16xf32>
    %20 = arith.truncf %17 : vector<16x32xf32> to vector<16x32xbf16>
    %cst_15 = arith.constant dense<0.000000e+00> : vector<16x32xf32>
    %21 = tpu.matmul %0, %20, %cst_15 {dimension_numbers = #tpu.dot_dimension_numbers<[1], [0], [0], [1], [0, 0, 1, 1], [], []>} : vector<16x16xbf16>, vector<16x32xbf16>, vector<16x32xf32> -> vector<16x32xf32>
    %22 = arith.truncf %21 : vector<16x32xf32> to vector<16x32xbf16>
    %cst_16 = arith.constant dense<0.000000e+00> : vector<16x32xf32>
    %23 = tpu.matmul %0, %22, %cst_16 {dimension_numbers = #tpu.dot_dimension_numbers<[1], [0], [0], [1], [0, 0, 1, 1], [], []>} : vector<16x16xbf16>, vector<16x32xbf16>, vector<16x32xf32> -> vector<16x32xf32>
    %24 = arith.truncf %23 : vector<16x32xf32> to vector<16x32xbf16>
    %25 = tpu.concatenate %20, %22, %24 in 1 : vector<16x32xbf16>, vector<16x32xbf16>, vector<16x32xbf16> -> vector<16x96xbf16>
    %cst_17 = arith.constant dense<0.000000e+00> : vector<16x16xf32>
    %26 = tpu.matmul %25, %18, %cst_17 {dimension_numbers = #tpu.dot_dimension_numbers<[1], [0], [0], [1], [0, 0, 1, 1], [], []>} : vector<16x96xbf16>, vector<96x16xbf16>, vector<16x16xf32> -> vector<16x16xf32>
    %27 = vector.broadcast %19 : vector<1x16xf32> to vector<16x16xf32>
    %28 = arith.addf %26, %27 : vector<16x16xf32>
    %cst_18 = arith.constant 0.000000e+00 : f32
    %29 = vector.broadcast %cst_18 : f32 to vector<16x16xf32>
    %30 = arith.cmpf oge, %28, %29 : vector<16x16xf32>
    %cst_19 = arith.constant 0.00999999977 : f32
    %31 = vector.broadcast %cst_19 : f32 to vector<16x16xf32>
    %32 = arith.mulf %31, %28 : vector<16x16xf32>
    %33 = arith.select %30, %28, %32 : vector<16x16xi1>, vector<16x16xf32>
    %c0_20 = arith.constant 0 : index
    %c0_21 = arith.constant 0 : index
    %34 = vector.load %arg6[%c0_20, %c0_21] : memref<48x8xbf16, #tpu.memory_space<vmem>>, vector<48x8xbf16>
    %c0_22 = arith.constant 0 : index
    %c0_23 = arith.constant 0 : index
    %35 = vector.load %arg7[%c0_22, %c0_23] : memref<1x8xf32, #tpu.memory_space<vmem>>, vector<1x8xf32>
    %36 = arith.truncf %33 : vector<16x16xf32> to vector<16x16xbf16>
    %cst_24 = arith.constant dense<0.000000e+00> : vector<16x16xf32>
    %37 = tpu.matmul %0, %36, %cst_24 {dimension_numbers = #tpu.dot_dimension_numbers<[1], [0], [0], [1], [0, 0, 1, 1], [], []>} : vector<16x16xbf16>, vector<16x16xbf16>, vector<16x16xf32> -> vector<16x16xf32>
    %38 = arith.truncf %37 : vector<16x16xf32> to vector<16x16xbf16>
    %cst_25 = arith.constant dense<0.000000e+00> : vector<16x16xf32>
    %39 = tpu.matmul %0, %38, %cst_25 {dimension_numbers = #tpu.dot_dimension_numbers<[1], [0], [0], [1], [0, 0, 1, 1], [], []>} : vector<16x16xbf16>, vector<16x16xbf16>, vector<16x16xf32> -> vector<16x16xf32>
    %40 = arith.truncf %39 : vector<16x16xf32> to vector<16x16xbf16>
    %41 = tpu.concatenate %36, %38, %40 in 1 : vector<16x16xbf16>, vector<16x16xbf16>, vector<16x16xbf16> -> vector<16x48xbf16>
    %cst_26 = arith.constant dense<0.000000e+00> : vector<16x8xf32>
    %42 = tpu.matmul %41, %34, %cst_26 {dimension_numbers = #tpu.dot_dimension_numbers<[1], [0], [0], [1], [0, 0, 1, 1], [], []>} : vector<16x48xbf16>, vector<48x8xbf16>, vector<16x8xf32> -> vector<16x8xf32>
    %43 = vector.broadcast %35 : vector<1x8xf32> to vector<16x8xf32>
    %44 = arith.addf %42, %43 : vector<16x8xf32>
    %cst_27 = arith.constant 0.000000e+00 : f32
    %45 = vector.broadcast %cst_27 : f32 to vector<16x8xf32>
    %46 = arith.cmpf oge, %44, %45 : vector<16x8xf32>
    %cst_28 = arith.constant 0.00999999977 : f32
    %47 = vector.broadcast %cst_28 : f32 to vector<16x8xf32>
    %48 = arith.mulf %47, %44 : vector<16x8xf32>
    %49 = arith.select %46, %44, %48 : vector<16x8xi1>, vector<16x8xf32>
    %c0_29 = arith.constant 0 : index
    %c0_30 = arith.constant 0 : index
    %50 = vector.load %arg8[%c0_29, %c0_30] : memref<1x8xbf16, #tpu.memory_space<vmem>>, vector<1x8xbf16>
    %51 = arith.truncf %49 : vector<16x8xf32> to vector<16x8xbf16>
    %cst_31 = arith.constant dense<0.000000e+00> : vector<1x16xf32>
    %52 = tpu.matmul %50, %51, %cst_31 {dimension_numbers = #tpu.dot_dimension_numbers<[1], [1], [0], [0], [0, 0, 1, 0], [], []>} : vector<1x8xbf16>, vector<16x8xbf16>, vector<1x16xf32> -> vector<1x16xf32>
    %c0_32 = arith.constant 0 : index
    %c0_33 = arith.constant 0 : index
    %53 = vector.load %arg9[%c0_32, %c0_33] : memref<1x1xf32, #tpu.memory_space<vmem>>, vector<1x1xf32>
    %54 = vector.broadcast %53 : vector<1x1xf32> to vector<1x16xf32>
    %55 = arith.addf %52, %54 : vector<1x16xf32>
    %cst_34 = arith.constant 0.000000e+00 : f32
    %56 = vector.broadcast %cst_34 : f32 to vector<1x16xf32>
    %57 = arith.subf %56, %55 : vector<1x16xf32>
    %58 = math.exp %57 : vector<1x16xf32>
    %cst_35 = arith.constant 1.000000e+00 : f32
    %59 = vector.broadcast %cst_35 : f32 to vector<1x16xf32>
    %60 = arith.addf %59, %58 : vector<1x16xf32>
    %61 = tpu.reciprocal %60 {approx = true} : vector<1x16xf32> -> vector<1x16xf32>
    %c0_36 = arith.constant 0 : index
    %c0_37 = arith.constant 0 : index
    %62 = vector.load %arg10[%c0_36, %c0_37] : memref<1x16xf32, #tpu.memory_space<vmem>>, vector<1x16xf32>
    tpu.vector_store %arg10[%c0_36, %c0_37], %61 {strides = array<i32>} : memref<1x16xf32, #tpu.memory_space<vmem>>, vector<1x16xf32>,
    return
  }
}

</mosaic_0001>

<bundles_post_ra>
// kernel: tpu_custom_call.1
= control target key start
LH: loop header
LB: loop body
LE: loop exit
PB: predicated region body
PF: predicated region fallthrough
CT: control target
= control target key end

     0   :  { %s1054_s0 = inlined_call_operand.vmem [shape: bf16[16,16], index: 0, kind: input, shape index: {}]   ;;  %s1055_s1 = inlined_call_operand.vmem [shape: f32[16,8], index: 1, kind: input, shape index: {}]   ;;  %s1056_s2 = inlined_call_operand.vmem [shape: bf16[24,32], index: 2, kind: input, shape index: {}]   ;;  %s1057_s3 = inlined_call_operand.vmem [shape: f32[1,32], index: 3, kind: input, shape index: {}]   ;;  %s1058_s4 = inlined_call_operand.vmem [shape: bf16[96,16], index: 4, kind: input, shape index: {}]   ;;  %s1059_s5 = inlined_call_operand.vmem [shape: f32[1,16], index: 5, kind: input, shape index: {}]   ;;  %s1060_s6 = inlined_call_operand.vmem [shape: bf16[48,8], index: 6, kind: input, shape index: {}]   ;;  %s1061_s7 = inlined_call_operand.vmem [shape: f32[1,8], index: 7, kind: input, shape index: {}]   ;;  %s1062_s8 = inlined_call_operand.vmem [shape: bf16[1,8], index: 8, kind: input, shape index: {}]   ;;  %s1063_s9 = inlined_call_operand.<no memory space> [shape: f32[1,1], index: 9, kind: input, shape index: {}]   ;;  %s1064_s10 = inlined_call_operand.hbm [shape: f32[1,16], index: 10, kind: output, shape index: {}]  }
   0x1   :  { %v15_v0 = vstv %s1063_s9 }
   0x2   :  { %16 = vst [vmem:[#allocation2] sm:$0x1] %v15_v0 }
   0x3   :  { %v41_v1 = vld [vmem:[%s1055_s1] sm:$0xff]  ;;  %v42_v2 = vld [vmem:[%s1055_s1 + $0x8] sm:$0xff]  ;;  %v859_v3 = vmov 0.0   ;;  %vm860_vm0 = vmmov 0   ;;  %vm53_vm1 = vcmask 130048  }
   0x4   :  { %734 = vmatprep.subr.bf16.mxu0 %v859_v3  ;;  %v47_v4 = vpack.c.bf16 %v42_v2, %v41_v1  ;;  %736 = vmatprep.mubr.msk.bf16.mxu0 %vm860_vm0, %v859_v3  ;;  %v937_v5 = vld [vmem:[%s1054_s0] sm:$0xff]  }
   0x5   :  { %740 = vmatprep.subr.bf16.mxu1 %v859_v3  ;;  %742 = vmatprep.mubr.msk.bf16.mxu1 %vm860_vm0, %v859_v3 }
   0x6   :  { %735 = vmatpush3.bf16.msra.mxu0 %v47_v4 }
   0x7   :  { %746 = vmatprep.subr.bf16.mxu0 %v859_v3 }
   0x9   :  { %737 = vmatmul.mubr.msk.bf16.vlgmr.msra.gmra.mrb[0].mxu0 %vm53_vm1, %v937_v5 }
   0xa   :  { %750 = vmatprep.mubr.msk.bf16.mxu0 %vm860_vm0, %v859_v3 }
   0xb   :  { %17 = vsyncpa [#allocation4], 0  ;;  %s861_s0 = smov 8   ;;  %v820_v11 = vld [vmem:[%s1056_s2] sm:$0xff]   ;;  %v821_v12 = vld [vmem:[%s1056_s2 + $0x8] ss:$0 sps:$4 sm:$0xff]  }
   0xc   :  { %vm171_vm2 = vcmask 1043456   ;;  %747 = vmatpush3.bf16.msra.mxu0 %v820_v11  ;;  %s862_s23 = smov 16   ;;  %vm147_vm3 = vcmask 64512   ;;  %vm168_vm4 = vcmask 195584   ;;  %v684_v23 = vld [vmem:[%s1057_s3] ss:$0 sm:$0xff] }
   0xd   :  { %748 = vmatprep.subr.bf16.mxu0 %v859_v3  ;;  %v173_v13 = vsel %vm171_vm2, %v821_v12, 0  ;;  %s863_s3 = smov 32   ;;  %v822_v40 = vld [vmem:[%s1058_s4] sm:$0xff]   ;;  %v823_v41 = vld [vmem:[%s1058_s4 + $0x8] sm:$0xff]   ;;  %v824_v42 = vld [vmem:[%s1058_s4 + $0x10] sm:$0xff]   ;;  %s864_s17 = smov 64  }
   0xe   :  { %v825_v43 = vld [vmem:[%s1058_s4 + $0x18] sm:$0xff]   ;;  %v826_v44 = vld [vmem:[%s1058_s4 + $0x20] sm:$0xff]   ;;  %v827_v45 = vld [vmem:[%s1058_s4 + $0x28] sm:$0xff]   ;;  %vm326_vm7 = vcmask 261120   ;;  %vm330_vm8 = vcmask 523264   ;;  %vm375_vm9 = vcmask 785408  }
   0xf   :  { %v690_v55 = vld [vmem:[%s1059_s5] ss:$0 sm:$0xff]  ;;  %v829_v11 = vld [vmem:[%s1060_s6 + $0x8] sm:$0xff]   ;;  %v830_v12 = vld [vmem:[%s1060_s6 + $0x10] sm:$0xff]   ;;  %vm552_vm12 = vcmask 392192   ;;  %vm665_vm15 = vcmask 122880  }
  0x10   :  { %749 = vmatpush3.bf16.msra.mxu0 %v173_v13 }
  0x11   :  { %760 = vmatprep.subr.bf16.mxu0 %v859_v3 }
  0xdc   :  { %v91_v6 = vpop.f32.mrb[0].mxu0 }
  0xdd   :  { %v738_v7 = vpop.f32.mrb[1].mxu0 }
  0xde   :  { %v94_v8 = vpop.f32.mrb[2].mxu0 }
  0xdf   :  { %v98_v9 = vpack.c.bf16 %v94_v8, %v91_v6  ;;  %v739_v10 = vpop.f32.mrb[3].mxu0 }
  0xe0   :  { %v828_v10 = vld [vmem:[%s1060_s6] sm:$0xff]  }
  0xe1   :  { %142 = vrot.lane.b32.xlu0 %v98_v9, %s861_s0  ;;  %741 = vmatpush3.bf16.msra.mxu1 %v98_v9 }
  0xe2   :  { %754 = vmatprep.subr.bf16.mxu1 %v859_v3 }
  0xe4   :  { %743 = vmatmul.mubr.msk.bf16.vlgmr.msra.gmra.mrb[0].mxu1 %vm53_vm1, %v937_v5 }
  0xe5   :  { %756 = vmatprep.mubr.msk.bf16.mxu1 %vm860_vm0, %v859_v3 }
 0x153   :  { %v143_v19 = vpop.permute.xlu0 %142 }
 0x154   :  { %v150_v20 = vsel %vm147_vm3, %v47_v4, %v143_v19 }
 0x1b7   :  { %v133_v14 = vpop.f32.mrb[0].mxu1 }
 0x1b8   :  { %v744_v15 = vpop.f32.mrb[1].mxu1 }
 0x1b9   :  { %v136_v16 = vpop.f32.mrb[2].mxu1 }
 0x1ba   :  { %v140_v17 = vpack.c.bf16 %v136_v16, %v133_v14  ;;  %v745_v18 = vpop.f32.mrb[3].mxu1 }
 0x1bc   :  { %145 = vrot.lane.b32.xlu0 %v140_v17, %s862_s23 }
 0x22e   :  { %v146_v21 = vpop.permute.xlu0 %145 }
 0x22f   :  { %v152_v22 = vsel %vm53_vm1, %v150_v20, %v146_v21  ;;  %v604_v21 = vld [vmem:[#allocation2] sm:$0x1] }
 0x230   :  { %751 = vmatmul.mubr.msk.bf16.vlgmr.msra.gmra.mrb[4].mxu0 %vm168_vm4, %v152_v22  ;;  %v865_v22 = vmov 0  }
 0x231   :  { %762 = vmatprep.mubr.msk.bf16.mxu0 %vm860_vm0, %v859_v3  ;;  %818 = vset.pattern.permute.xlu0 %v865_v22 }
 0x303   :  { %v209_v24 = vpop.f32.mrb[4].mxu0 }
 0x304   :  { %v210_v25 = vadd.f32 %v684_v23, %v209_v24  ;;  %v752_v26 = vpop.f32.mrb[5].mxu0 }
 0x305   :  { %v212_v27 = vpop.f32.mrb[6].mxu0 }
 0x306   :  { %v218_v28 = vmul.f32 0.01, %v210_v25  ;;  %v213_v29 = vadd.f32 %v684_v23, %v212_v27  ;;  %v753_v30 = vpop.f32.mrb[7].mxu0  ;;  %vm216_vm5 = vcmp.ge.f32.partialorder %v210_v25, 0.0 }
 0x308   :  { %vm217_vm6 = vcmp.ge.f32.partialorder %v213_v29, 0.0  ;;  %v219_v31 = vmul.f32 0.01, %v213_v29  ;;  %v220_v32 = vsel %vm216_vm5, %v210_v25, %v218_v28 }
 0x30a   :  { %v221_v33 = vsel %vm217_vm6, %v213_v29, %v219_v31 }
 0x30b   :  { %v235_v34 = vpack.c.bf16 %v221_v33, %v220_v32 }
 0x30d   :  { %755 = vmatpush3.bf16.msra.mxu1 %v235_v34 }
 0x30e   :  { %766 = vmatprep.subr.bf16.mxu1 %v859_v3 }
 0x310   :  { %757 = vmatmul.mubr.msk.bf16.vlgmr.msra.gmra.mrb[4].mxu1 %vm53_vm1, %v937_v5 }
 0x311   :  { %778 = vmatprep.mubr.msk.bf16.mxu1 %vm860_vm0, %v859_v3  ;;  %767 = vmatpush3.bf16.msra.mxu1 %v822_v40 }
 0x312   :  { %768 = vmatprep.subr.bf16.mxu1 %v859_v3 }
 0x315   :  { %769 = vmatpush3.bf16.msra.mxu1 %v823_v41 }
 0x316   :  { %770 = vmatprep.subr.bf16.mxu1 %v859_v3 }
 0x319   :  { %771 = vmatpush3.bf16.msra.mxu1 %v824_v42 }
 0x31a   :  { %772 = vmatprep.subr.bf16.mxu1 %v859_v3 }
 0x31d   :  { %773 = vmatpush3.bf16.msra.mxu1 %v825_v43 }
 0x31e   :  { %774 = vmatprep.subr.bf16.mxu1 %v859_v3 }
 0x321   :  { %775 = vmatpush3.bf16.msra.mxu1 %v826_v44 }
 0x322   :  { %776 = vmatprep.subr.bf16.mxu1 %v859_v3 }
 0x325   :  { %777 = vmatpush3.bf16.msra.mxu1 %v827_v45 }
 0x326   :  { %804 = vmatprep.subr.bf16.mxu1 %v859_v3 }
 0x3e3   :  { %v270_v35 = vpop.f32.mrb[4].mxu1 }
 0x3e4   :  { %v758_v36 = vpop.f32.mrb[5].mxu1 }
 0x3e5   :  { %v273_v37 = vpop.f32.mrb[6].mxu1  ;;  %v610_v36 = vlaneseq }
 0x3e6   :  { %v277_v38 = vpack.c.bf16 %v273_v37, %v270_v35  ;;  %v759_v39 = vpop.f32.mrb[7].mxu1  ;;  %v602_v35 = vld [vmem:[%s1062_s8] sm:$0x1] }
 0x3e7   :  { %v611_v37 = vshrl.u32 %v610_v36, 7 }
 0x3e8   :  { %321 = vrot.lane.b32.xlu1 %v277_v38, %s863_s3  ;;  %761 = vmatpush3.bf16.msra.mxu0 %v277_v38 }
 0x3e9   :  { %782 = vmatprep.subr.bf16.mxu0 %v859_v3  ;;  %v612_v38 = vsub.s32 0, %v611_v37 }
 0x3eb   :  { %763 = vmatmul.mubr.msk.bf16.vlgmr.msra.gmra.mrb[8].mxu0 %vm53_vm1, %v937_v5 }
 0x3ec   :  { %784 = vmatprep.mubr.msk.bf16.mxu0 %vm860_vm0, %v859_v3 }
 0x45a   :  { %v322_v51 = vpop.permute.xlu1 %321 }
 0x45b   :  { %v329_v52 = vsel %vm326_vm7, %v235_v34, %v322_v51 }
 0x4be   :  { %v312_v46 = vpop.f32.mrb[8].mxu0 }
 0x4bf   :  { %v764_v47 = vpop.f32.mrb[9].mxu0 }
 0x4c0   :  { %v315_v48 = vpop.f32.mrb[10].mxu0 }
 0x4c1   :  { %v319_v49 = vpack.c.bf16 %v315_v48, %v312_v46  ;;  %v765_v50 = vpop.f32.mrb[11].mxu0 }
 0x4c3   :  { %324 = vrot.lane.b32.xlu1 %v319_v49, %s864_s17 }
 0x535   :  { %v325_v53 = vpop.permute.xlu1 %324 }
 0x536   :  { %v332_v54 = vsel %vm330_vm8, %v329_v52, %v325_v53 }
 0x537   :  { %779 = vmatmul.mubr.msk.bf16.vlgmr.msra.gmra.mrb[8].mxu1 %vm375_vm9, %v332_v54 }
 0x538   :  { %806 = vmatprep.mubr.msk.bf16.mxu1 %vm860_vm0, %v859_v3 }
 0x60a   :  { %v412_v56 = vpop.f32.mrb[8].mxu1 }
 0x60b   :  { %v413_v57 = vadd.f32 %v690_v55, %v412_v56  ;;  %v780_v58 = vpop.f32.mrb[9].mxu1 }
 0x60c   :  { %v415_v59 = vpop.f32.mrb[10].mxu1 }
 0x60d   :  { %v421_v60 = vmul.f32 0.01, %v413_v57  ;;  %v416_v61 = vadd.f32 %v690_v55, %v415_v59  ;;  %v781_v62 = vpop.f32.mrb[11].mxu1  ;;  %vm419_vm10 = vcmp.ge.f32.partialorder %v413_v57, 0.0 }
 0x60f   :  { %vm420_vm11 = vcmp.ge.f32.partialorder %v416_v61, 0.0  ;;  %v422_v63 = vmul.f32 0.01, %v416_v61  ;;  %v423_v0 = vsel %vm419_vm10, %v413_v57, %v421_v60 }
 0x611   :  { %v424_v1 = vsel %vm420_vm11, %v416_v61, %v422_v63 }
 0x612   :  { %v432_v2 = vpack.c.bf16 %v424_v1, %v423_v0 }
 0x614   :  { %783 = vmatpush3.bf16.msra.mxu0 %v432_v2 }
 0x615   :  { %788 = vmatprep.subr.bf16.mxu0 %v859_v3 }
 0x617   :  { %785 = vmatmul.mubr.msk.bf16.vlgmr.msra.gmra.mrb[12].mxu0 %vm53_vm1, %v937_v5 }
 0x618   :  { %790 = vmatprep.mubr.msk.bf16.mxu0 %vm860_vm0, %v859_v3 }
 0x6ea   :  { %v467_v4 = vpop.f32.mrb[12].mxu0 }
 0x6eb   :  { %v786_v6 = vpop.f32.mrb[13].mxu0 }
 0x6ec   :  { %v470_v7 = vpop.f32.mrb[14].mxu0 }
 0x6ed   :  { %v474_v8 = vpack.c.bf16 %v470_v7, %v467_v4  ;;  %v787_v9 = vpop.f32.mrb[15].mxu0 }
 0x6ef   :  { %518 = vrot.lane.b32.xlu0 %v474_v8, %s862_s23  ;;  %789 = vmatpush3.bf16.msra.mxu0 %v474_v8 }
 0x6f0   :  { %794 = vmatprep.subr.bf16.mxu0 %v859_v3 }
 0x6f2   :  { %791 = vmatmul.mubr.msk.bf16.vlgmr.msra.gmra.mrb[16].mxu0 %vm53_vm1, %v937_v5 }
 0x6f3   :  { %800 = vmatprep.mubr.msk.bf16.mxu0 %vm860_vm0, %v859_v3  ;;  %795 = vmatpush3.bf16.msra.mxu0 %v828_v10 }
 0x6f4   :  { %796 = vmatprep.subr.bf16.mxu0 %v859_v3  ;;  %607 = vperm.xlu0 %818, %v604_v21  }
 0x6f7   :  { %797 = vmatpush3.bf16.msra.mxu0 %v829_v11 }
 0x6f8   :  { %798 = vmatprep.subr.bf16.mxu0 %v859_v3  ;;  %v700_v3 = vld [vmem:[%s1061_s7] ss:$0 sm:$0xff]  ;;  %s866_s7 = smov [#allocation3]  }
 0x6f9   :  { %s673_s8 = sshll.u32 %s866_s7, 4  ;;  %s674_s8 = int_to_ptr.vmem [resolvable:$true] %s673_s8 }
 0x6fa   :  { %s835_s2 = scalar_lea.vmem %s674_s8, 16  ;;  %s839_s24 = scalar_lea.vmem %s674_s8, 32 }
 0x6fb   :  { %799 = vmatpush3.bf16.msra.mxu0 %v830_v12  ;;  %p836_p0 = scmp.ne.s32.totalorder %s674_s8, %s835_s2  ;;  %p840_p1 = scmp.lt.s32.totalorder %s674_s8, %s674_s8 }
 0x6fc   :  { %p841_p2 = scmp.lt.s32.totalorder %s839_s24, %s835_s2 }
 0x6fe   :  { %p842_p3 = por %p841_p2, %p840_p1 }
 0x700   :  { %p843_p4 = pnand %p842_p3, %p836_p0 }
 0x761   :  { %v519_v17 = vpop.permute.xlu0 %518 }
 0x762   :  { %v525_v18 = vsel %vm53_vm1, %v432_v2, %v519_v17 }
 0x773   :  { %v608_v39 = vpop.permute.xlu0 %607 }
 0x774   :  { %v613_v40 = vrot.slane %v608_v39, %v612_v38 }
 0x7c5   :  { %v509_v5 = vpop.f32.mrb[16].mxu0 }
 0x7c6   :  { %v792_v13 = vpop.f32.mrb[17].mxu0 }
 0x7c7   :  { %v512_v14 = vpop.f32.mrb[18].mxu0 }
 0x7c8   :  { %v516_v15 = vpack.c.bf16 %v512_v14, %v509_v5  ;;  %v793_v16 = vpop.f32.mrb[19].mxu0 }
 0x7ca   :  { %521 = vrot.lane.b32.xlu1 %v516_v15, %s863_s3 }
 0x83c   :  { %v522_v19 = vpop.permute.xlu1 %521 }
 0x83d   :  { %v527_v20 = vsel %vm326_vm7, %v525_v18, %v522_v19 }
 0x83e   :  { %801 = vmatmul.mubr.msk.bf16.vlgmr.msra.gmra.mrb[20].mxu0 %vm552_vm12, %v527_v20 }
 0x911   :  { %v589_v23 = vpop.f32.mrb[20].mxu0 }
 0x912   :  { %v590_v24 = vadd.f32 %v700_v3, %v589_v23  ;;  %v802_v25 = vpop.f32.mrb[21].mxu0 }
 0x913   :  { %v592_v26 = vpop.f32.mrb[22].mxu0 }
 0x914   :  { %v598_v27 = vmul.f32 0.01, %v590_v24  ;;  %v593_v28 = vadd.f32 %v700_v3, %v592_v26  ;;  %v803_v29 = vpop.f32.mrb[23].mxu0  ;;  %vm596_vm13 = vcmp.ge.f32.partialorder %v590_v24, 0.0 }
 0x916   :  { %vm597_vm14 = vcmp.ge.f32.partialorder %v593_v28, 0.0  ;;  %v599_v30 = vmul.f32 0.01, %v593_v28  ;;  %v600_v31 = vsel %vm596_vm13, %v590_v24, %v598_v27 }
 0x918   :  { %v601_v32 = vsel %vm597_vm14, %v593_v28, %v599_v30 }
 0x919   :  { %v603_v33 = vpack.c.bf16 %v601_v32, %v600_v31 }
 0x91b   :  { %v618_v34 = vsel %vm147_vm3, %v603_v33, 0 }
 0x91c   :  { %805 = vmatpush3.bf16.xpose.msra.mxu1 %v618_v34 }
 0x923   :  { %807 = vmatmul.mubr.msk.bf16.vlgmr.msra.gmra.mrb[12].mxu1 %vm147_vm3, %v602_v35 }
 0x9f6   :  { %v654_v41 = vpop.f32.mrb[12].mxu1 }
 0x9f7   :  { %v655_v42 = vadd.f32 %v654_v41, %v613_v40  ;;  %v808_v43 = vpop.f32.mrb[13].mxu1 }
 0x9f8   :  { %v657_v44 = vpop.f32.mrb[14].mxu1 }
 0x9f9   :  { %v660_v45 = vsub.f32 0.0, %v655_v42  ;;  %v809_v46 = vpop.f32.mrb[15].mxu1 }
 0x9fb   :  { %v661_v47 = vmul.f32 1.442695, %v660_v45 }
 0x9fd   :  { %831 = vpow2.f32 %v661_v47 }
 0xa07   :  { %v832_v48 = vpop.eup %831 }
 0xa08   :  { %v663_v49 = vadd.f32 1.0, %v832_v48 }
 0xa0a   :  { %833 = vrcp.f32 %v663_v49 }
 0xa14   :  { %v834_v50 = vpop.eup %833 }
 0xa15   :  { %666 = vst.msk [vmem:[#allocation3] sm:$0x1] %vm665_vm15, %v834_v50 }
 0xa16   :  { %846 = shalt.err (!%p843_p4)
}
 0xa17   :  { %s847_s26 = scalar_lea.hbm %s1064_s10, 16 }
 0xa18   :  { %p848_p5 = scmp.ne.s32.totalorder %s1064_s10, %s847_s26  ;;  %p851_p6 = scmp.lt.u32.totalorder %s847_s26, %s1064_s10 }
 0xa1a   :  { %p853_p7 = pnand %p851_p6, %p848_p5 }
 0xa1c   :  { %856 = shalt.err (!%p853_p7)
}
 0xa1d   :  { %676 = dma.vmem_to_hbm [thread:$0]  %s674_s8, 16, %s1064_s10, [#allocation4]  }
 0xa1e   :  { %857 = dma.done.wait [#allocation4], 16  }
 0xa1f   :  { %858 = vsyncadd [#allocation4], 4294967280 }
 0xa20   :  { %680 = vsyncpa [#allocation4], 1 }

</bundles_post_ra>
